<compile_context>
chip_gen: v7x
topology: tpu7x:2x2x1
jax: 0.10.0
libtpu: 0.0.40
codegen_flags: <defaults>
</compile_context>

<pallas_src>
import jax
import jax.numpy as jnp
from jax import lax
from jax.experimental import pallas as pl
from jax.experimental.pallas import tpu as pltpu


# ----------------------------------------------------------------------------- helpers

def _round_up(n, m):
    return ((n + m - 1) // m) * m


def _pad_axis(a, axis, target):
    pad = target - a.shape[axis]
    if pad == 0:
        return a
    widths = [(0, 0)] * a.ndim
    widths[axis] = (0, pad)
    return jnp.pad(a, widths)


def _vmem_capacity_bytes():
    try:
        return int(pltpu.get_tpu_info().vmem_capacity_bytes)
    except Exception:
        return 64 << 20  # v7x-sized fallback: safe lower bound on every generation


def _vmem_limit_bytes(tile_b, tile_k, tile_out, R, itemsize):
    """Per-step footprint: double-buffered streamed tiles + f32 scratch/temps."""
    streamed = 2 * itemsize * (tile_b * tile_k        # x tile
                               + tile_b * R           # t tile
                               + tile_out * tile_k    # base tile
                               + tile_out * R         # U tile
                               + tile_b * tile_out)   # output tile
    scratch_f32 = 4 * tile_b * tile_out * 3           # accumulator + dot temporaries
    est = streamed + scratch_f32 + (4 << 20)          # compiler-internal slack
    cap = _vmem_capacity_bytes() - (8 << 20)          # stay below physical VMEM
    return int(min(max(est, 16 << 20), cap))


def _choose_tiles(B, In, Out, desired_b, desired_out, desired_k):
    # tile_b multiple of 8 (or full padded B); tile_out / tile_k multiples of 128.
    tile_b = min(desired_b, _round_up(B, 8))
    tile_out = min(desired_out, _round_up(Out, 128))
    tile_k = min(desired_k, _round_up(In, 128))
    return tile_b, tile_out, tile_k


# ----------------------------------------------------------------------------- kernels

def _delta_kernel(x_ref, t_ref, base_ref, u_ref, o_ref, acc_ref):
    # Grid: (b, o, k) with k (the In reduction) innermost / "arbitrary".
    # x_ref    : (TB, TK)   base_ref : (TO, TK)
    # t_ref    : (TB, R)    u_ref    : (TO, R)     (k-invariant blocks)
    # o_ref    : (TB, TO)   acc_ref  : (TB, TO) f32 scratch
    k = pl.program_id(2)

    @pl.when(k == 0)
    def _init():
        # Rank-R correction t @ U_tile.T folded into the accumulator init so it
        # is paid once per (b, o) tile, not once per K step.
        acc_ref[...] = lax.dot_general(
            t_ref[...], u_ref[...], (((1,), (1,)), ((), ())),
            preferred_element_type=jnp.float32)

    acc_ref[...] += lax.dot_general(
        x_ref[...], base_ref[...], (((1,), (1,)), ((), ())),
        preferred_element_type=jnp.float32)

    @pl.when(k == pl.num_programs(2) - 1)
    def _store():
        o_ref[...] = acc_ref[...].astype(o_ref.dtype)


def _base_kernel(x_ref, base_ref, o_ref, acc_ref):
    # Dedicated path for all_U is None: y = x @ base.T.
    k = pl.program_id(2)

    @pl.when(k == 0)
    def _init():
        acc_ref[...] = jnp.zeros_like(acc_ref)

    acc_ref[...] += lax.dot_general(
        x_ref[...], base_ref[...], (((1,), (1,)), ((), ())),
        preferred_element_type=jnp.float32)

    @pl.when(k == pl.num_programs(2) - 1)
    def _store():
        o_ref[...] = acc_ref[...].astype(o_ref.dtype)


# ----------------------------------------------------------------------------- wrappers

def delta_forward(x, base, U, S, V, *, tile_b=256, tile_out=512, tile_k=1024):
    """y = x @ (base + (U * S) @ V.T).T  without materializing the dense delta."""
    B, In = x.shape
    Out, In_b = base.shape
    assert In == In_b
    R = S.shape[-1]
    assert U.shape == (Out, R) and V.shape == (In, R)

    # Tiny rank-R precompute: t = (x @ V) * S, shape (B, R).  O(B*In*R) flops.
    t = (jnp.dot(x, V.astype(x.dtype), preferred_element_type=jnp.float32)
         * S.reshape(1, R).astype(jnp.float32)).astype(x.dtype)

    # Match the module's `.to(x.dtype)` on the weight (no-op when dtypes agree).
    base = base.astype(x.dtype)
    U = U.astype(x.dtype)

    tb, to, tk = _choose_tiles(B, In, Out, tile_b, tile_out, tile_k)
    B_pad, Out_pad, In_pad = _round_up(B, tb), _round_up(Out, to), _round_up(In, tk)

    xp = _pad_axis(_pad_axis(x, 0, B_pad), 1, In_pad)
    tp = _pad_axis(t, 0, B_pad)
    bp = _pad_axis(_pad_axis(base, 0, Out_pad), 1, In_pad)
    up = _pad_axis(U, 0, Out_pad)

    grid = (B_pad // tb, Out_pad // to, In_pad // tk)
    itemsize = jnp.dtype(x.dtype).itemsize
    vmem_limit = _vmem_limit_bytes(tb, tk, to, R, itemsize)

    cost = pl.CostEstimate(
        flops=2 * B * Out * In + 2 * B * Out * R + 2 * B * In * R,
        transcendentals=0,
        bytes_accessed=itemsize * (Out * In + B * In + B * Out + Out * R + B * R))

    out = pl.pallas_call(
        _delta_kernel,
        out_shape=jax.ShapeDtypeStruct((B_pad, Out_pad), x.dtype),
        grid_spec=pltpu.PrefetchScalarGridSpec(
            num_scalar_prefetch=0,
            grid=grid,
            in_specs=[
                pl.BlockSpec((tb, tk), lambda b, o, k: (b, k)),   # x tile
                pl.BlockSpec((tb, R), lambda b, o, k: (b, 0)),    # t tile (k-invariant)
                pl.BlockSpec((to, tk), lambda b, o, k: (o, k)),   # base tile
                pl.BlockSpec((to, R), lambda b, o, k: (o, 0)),    # U tile (k-invariant)
            ],
            out_specs=pl.BlockSpec((tb, to), lambda b, o, k: (b, o)),
            scratch_shapes=[pltpu.VMEM((tb, to), jnp.float32)],
        ),
        compiler_params=pltpu.CompilerParams(
            dimension_semantics=("parallel", "parallel", "arbitrary"),
            vmem_limit_bytes=vmem_limit),
        cost_estimate=cost,
    )(xp, tp, bp, up)

    return out[:B, :Out]


def delta_forward_base_only(x, base, *, tile_b=256, tile_out=512, tile_k=1024):
    """Path taken when all_U is None: y = x @ base.T."""
    B, In = x.shape
    Out, In_b = base.shape
    assert In == In_b
    base = base.astype(x.dtype)

    tb, to, tk = _choose_tiles(B, In, Out, tile_b, tile_out, tile_k)
    B_pad, Out_pad, In_pad = _round_up(B, tb), _round_up(Out, to), _round_up(In, tk)

    xp = _pad_axis(_pad_axis(x, 0, B_pad), 1, In_pad)
    bp = _pad_axis(_pad_axis(base, 0, Out_pad), 1, In_pad)

    grid = (B_pad // tb, Out_pad // to, In_pad // tk)
    itemsize = jnp.dtype(x.dtype).itemsize
    vmem_limit = _vmem_limit_bytes(tb, tk, to, 0, itemsize)

    cost = pl.CostEstimate(
        flops=2 * B * Out * In,
        transcendentals=0,
        bytes_accessed=itemsize * (Out * In + B * In + B * Out))

    out = pl.pallas_call(
        _base_kernel,
        out_shape=jax.ShapeDtypeStruct((B_pad, Out_pad), x.dtype),
        grid_spec=pltpu.PrefetchScalarGridSpec(
            num_scalar_prefetch=0,
            grid=grid,
            in_specs=[
                pl.BlockSpec((tb, tk), lambda b, o, k: (b, k)),   # x tile
                pl.BlockSpec((to, tk), lambda b, o, k: (o, k)),   # base tile
            ],
            out_specs=pl.BlockSpec((tb, to), lambda b, o, k: (b, o)),
            scratch_shapes=[pltpu.VMEM((tb, to), jnp.float32)],
        ),
        compiler_params=pltpu.CompilerParams(
            dimension_semantics=("parallel", "parallel", "arbitrary"),
            vmem_limit_bytes=vmem_limit),
        cost_estimate=cost,
    )(xp, bp)

    return out[:B, :Out]


# ----------------------------------------------------------------------------- demo

if __name__ == "__main__":
    key = jax.random.PRNGKey(0)
    kx, kb, ku, ks, kv, kum, kvm, kx2, kb2, ku2, ks2, kv2 = jax.random.split(key, 12)

    # Case 1: small, ragged shapes (exercise padding + single-tile grid).
    B, In, Out, R = 8, 200, 320, 8
    x = jax.random.normal(kx, (B, In), dtype=jnp.float32)
    base = jax.random.normal(kb, (Out, In), dtype=jnp.float32) * 0.05
    U_raw = jax.random.normal(ku, (Out, R), dtype=jnp.float32) * 0.1
    V_raw = jax.random.normal(kv, (In, R), dtype=jnp.float32) * 0.1
    S = jnp.abs(jax.random.normal(ks, (R,), dtype=jnp.float32))
    # Sparsity masks (registered buffers in the module) applied to U / V.
    U_mask = (jax.random.uniform(kum, (Out, R)) > 0.5).astype(jnp.float32)
    V_mask = (jax.random.uniform(kvm, (In, R)) > 0.5).astype(jnp.float32)
    U = U_raw * U_mask
    V = V_raw * V_mask

    y = jax.block_until_ready(delta_forward(x, base, U, S, V))
    y_base = jax.block_until_ready(delta_forward_base_only(x, base))

    w_ref = base + (U * S[None, :]) @ V.T
    y_ref = x @ w_ref.T
    y_base_ref = x @ base.T
    assert jnp.allclose(y, y_ref, rtol=2e-3, atol=2e-3), "delta path mismatch"
    assert jnp.allclose(y_base, y_base_ref, rtol=2e-3, atol=2e-3), "base path mismatch"

    # Case 2: small tiles forced so the (B, Out, K) grid and the f32 accumulator
    # across the K axis are actually exercised (grid = (2, 2, 3)).
    B2, In2, Out2, R2 = 16, 384, 256, 8
    x2 = jax.random.normal(kx2, (B2, In2), dtype=jnp.float32)
    base2 = jax.random.normal(kb2, (Out2, In2), dtype=jnp.float32) * 0.05
    U2 = jax.random.normal(ku2, (Out2, R2), dtype=jnp.float32) * 0.1
    V2 = jax.random.normal(kv2, (In2, R2), dtype=jnp.float32) * 0.1
    S2 = jnp.abs(jax.random.normal(ks2, (R2,), dtype=jnp.float32))

    y2 = jax.block_until_ready(
        delta_forward(x2, base2, U2, S2, V2, tile_b=8, tile_out=128, tile_k=128))
    y2_ref = x2 @ (base2 + (U2 * S2[None, :]) @ V2.T).T
    assert jnp.allclose(y2, y2_ref, rtol=2e-3, atol=2e-3), "tiled delta path mismatch"

    print("KERNEL_OK")
</pallas_src>

<mosaic_0001>
module attributes {stable_mosaic.version = 11 : i64} {
  func.func @_delta_kernel(%arg0: i32, %arg1: i32, %arg2: i32, %arg3: memref<8x256xf32, #tpu.memory_space<vmem>>, %arg4: memref<8x8xf32, #tpu.memory_space<vmem>>, %arg5: memref<384x256xf32, #tpu.memory_space<vmem>>, %arg6: memref<384x8xf32, #tpu.memory_space<vmem>>, %arg7: memref<8x384xf32, #tpu.memory_space<vmem>>, %arg8: memref<8x384xf32, #tpu.memory_space<vmem>>) attributes {dimension_semantics = [#tpu.dimension_semantics<parallel>, #tpu.dimension_semantics<parallel>, #tpu.dimension_semantics<arbitrary>], iteration_bounds = array<i64: 1, 1, 1>, scalar_prefetch = 0 : i64, scratch_operands = 1 : i64, tpu.core_type = #tpu.core_type<tc>, window_params = [{transform_indices = @transform_0, window_bounds = array<i64: 8, 256>}, {transform_indices = @transform_1, window_bounds = array<i64: 8, 8>}, {transform_indices = @transform_2, window_bounds = array<i64: 384, 256>}, {transform_indices = @transform_3, window_bounds = array<i64: 384, 8>}, {transform_indices = @transform_4, window_bounds = array<i64: 8, 384>}]} {
    %c0_i32 = arith.constant 0 : i32
    %0 = arith.cmpi eq, %arg2, %c0_i32 : i32
    %1 = arith.extui %0 : i1 to i32
    %c0_i32_0 = arith.constant 0 : i32
    %2 = arith.cmpi ne, %1, %c0_i32_0 : i32
    scf.if %2 {
      %c0_10 = arith.constant 0 : index
      %c0_11 = arith.constant 0 : index
      %12 = vector.load %arg4[%c0_10, %c0_11] : memref<8x8xf32, #tpu.memory_space<vmem>>, vector<8x8xf32>
      %c0_12 = arith.constant 0 : index
      %c0_13 = arith.constant 0 : index
      %13 = vector.load %arg6[%c0_12, %c0_13] : memref<384x8xf32, #tpu.memory_space<vmem>>, vector<384x8xf32>
      %cst_14 = arith.constant dense<0.000000e+00> : vector<8x384xf32>
      %14 = tpu.matmul %12, %13, %cst_14 {dimension_numbers = #tpu.dot_dimension_numbers<[1], [1], [0], [0], [0, 0, 1, 0], [], []>} : vector<8x8xf32>, vector<384x8xf32>, vector<8x384xf32> -> vector<8x384xf32>
      %c0_15 = arith.constant 0 : index
      %c0_16 = arith.constant 0 : index
      %15 = vector.load %arg8[%c0_15, %c0_16] : memref<8x384xf32, #tpu.memory_space<vmem>>, vector<8x384xf32>
      tpu.vector_store %arg8[%c0_15, %c0_16], %14 {strides = array<i32>} : memref<8x384xf32, #tpu.memory_space<vmem>>, vector<8x384xf32>,
    } else {
    }
    %c0 = arith.constant 0 : index
    %c0_1 = arith.constant 0 : index
    %3 = vector.load %arg8[%c0, %c0_1] : memref<8x384xf32, #tpu.memory_space<vmem>>, vector<8x384xf32>
    %c0_2 = arith.constant 0 : index
    %c0_3 = arith.constant 0 : index
    %4 = vector.load %arg3[%c0_2, %c0_3] : memref<8x256xf32, #tpu.memory_space<vmem>>, vector<8x256xf32>
    %c0_4 = arith.constant 0 : index
    %c0_5 = arith.constant 0 : index
    %5 = vector.load %arg5[%c0_4, %c0_5] : memref<384x256xf32, #tpu.memory_space<vmem>>, vector<384x256xf32>
    %cst = arith.constant dense<0.000000e+00> : vector<8x384xf32>
    %6 = tpu.matmul %4, %5, %cst {dimension_numbers = #tpu.dot_dimension_numbers<[1], [1], [0], [0], [0, 0, 1, 0], [], []>} : vector<8x256xf32>, vector<384x256xf32>, vector<8x384xf32> -> vector<8x384xf32>
    %7 = arith.addf %3, %6 : vector<8x384xf32>
    %c0_6 = arith.constant 0 : index
    %c0_7 = arith.constant 0 : index
    %8 = vector.load %arg8[%c0_6, %c0_7] : memref<8x384xf32, #tpu.memory_space<vmem>>, vector<8x384xf32>
    tpu.vector_store %arg8[%c0_6, %c0_7], %7 {strides = array<i32>} : memref<8x384xf32, #tpu.memory_space<vmem>>, vector<8x384xf32>,
    %c0_i32_8 = arith.constant 0 : i32
    %9 = arith.cmpi eq, %arg2, %c0_i32_8 : i32
    %10 = arith.extui %9 : i1 to i32
    %c0_i32_9 = arith.constant 0 : i32
    %11 = arith.cmpi ne, %10, %c0_i32_9 : i32
    scf.if %11 {
      %c0_10 = arith.constant 0 : index
      %c0_11 = arith.constant 0 : index
      %12 = vector.load %arg8[%c0_10, %c0_11] : memref<8x384xf32, #tpu.memory_space<vmem>>, vector<8x384xf32>
      %c0_12 = arith.constant 0 : index
      %c0_13 = arith.constant 0 : index
      %13 = vector.load %arg7[%c0_12, %c0_13] : memref<8x384xf32, #tpu.memory_space<vmem>>, vector<8x384xf32>
      tpu.vector_store %arg7[%c0_12, %c0_13], %12 {strides = array<i32>} : memref<8x384xf32, #tpu.memory_space<vmem>>, vector<8x384xf32>,
    } else {
    }
    return
  }
  func.func @transform_0(%arg0: i32, %arg1: i32, %arg2: i32) -> (i32, i32) {
    %c0_i32 = arith.constant 0 : i32
    return %arg0, %arg2 : i32, i32
  }
  func.func @transform_1(%arg0: i32, %arg1: i32, %arg2: i32) -> (i32, i32) {
    %c0_i32 = arith.constant 0 : i32
    %c0_i32_0 = arith.constant 0 : i32
    return %arg0, %c0_i32 : i32, i32
  }
  func.func @transform_2(%arg0: i32, %arg1: i32, %arg2: i32) -> (i32, i32) {
    %c0_i32 = arith.constant 0 : i32
    return %arg1, %arg2 : i32, i32
  }
  func.func @transform_3(%arg0: i32, %arg1: i32, %arg2: i32) -> (i32, i32) {
    %c0_i32 = arith.constant 0 : i32
    %c0_i32_0 = arith.constant 0 : i32
    return %arg1, %c0_i32 : i32, i32
  }
  func.func @transform_4(%arg0: i32, %arg1: i32, %arg2: i32) -> (i32, i32) {
    %c0_i32 = arith.constant 0 : i32
    return %arg0, %arg1 : i32, i32
  }
}

</mosaic_0001>

<bundles_post_ra>
// kernel: tpu_custom_call.1
= control target key start
LH: loop header
LB: loop body
LE: loop exit
PB: predicated region body
PF: predicated region fallthrough
CT: control target
= control target key end

     0   :  { %9 = vsyncpa [#allocation4], 0  ;;  %s1299_s0 = inlined_call_operand.vmem [shape: f32[8,256], index: 0, kind: input, shape index: {}]   ;;  %s1300_s1 = inlined_call_operand.vmem [shape: f32[8,8], index: 1, kind: input, shape index: {}]   ;;  %s1301_s2 = inlined_call_operand.hbm [shape: f32[384,256], index: 2, kind: input, shape index: {}]   ;;  %s1302_s3 = inlined_call_operand.vmem [shape: f32[384,8], index: 3, kind: input, shape index: {}]   ;;  %s1303_s4 = inlined_call_operand.hbm [shape: f32[8,384], index: 4, kind: output, shape index: {}]  }
   0x1   :  { %10 = vsyncpa [#allocation5], 0  ;;  %s1020_s15 = smov [#allocation3]   ;;  %s972_s19 = scalar_lea.hbm %s1301_s2, 12288 }
   0x2   :  { %s20_s16 = sshll.u32 %s1020_s15, 4  ;;  %p973_p0 = scmp.ne.s32.totalorder %s1301_s2, %s972_s19  ;;  %s21_s16 = int_to_ptr.vmem [resolvable:$true] %s20_s16 }
   0x3   :  { %p976_p1 = scmp.lt.u32.totalorder %s972_s19, %s1301_s2 }
   0x5   :  { %p978_p2 = pnand %p976_p1, %p973_p0 }
   0x7   :  { %981 = shalt.err (!%p978_p2)
}
   0x8   :  { %s982_s24 = scalar_lea.vmem %s21_s16, 12288  ;;  %p987_p4 = scmp.lt.s32.totalorder %s21_s16, %s21_s16 }
   0x9   :  { %p983_p3 = scmp.ne.s32.totalorder %s21_s16, %s982_s24  ;;  %p988_p5 = scmp.lt.s32.totalorder %s982_s24, %s982_s24 }
   0xb   :  { %p989_p6 = por %p988_p5, %p987_p4 }
   0xd   :  { %p990_p7 = pnand %p989_p6, %p983_p3 }
   0xf   :  { %993 = shalt.err (!%p990_p7)
}
  0x10   :  { %s1021_s25 = smov 256   ;;  %s1022_s26 = smov 16  }
  0x11   :  { %26 = dma.hbm_to_vmem [thread:$0]  %s1301_s2, 12288, %s21_s16, [#allocation4], %s1021_s25, %s1021_s25, %s1022_s26  }
  0x12   :  { %1016 = dma.done.wait [#allocation4], 12288  }
  0x13   :  { %1017 = vsyncadd [#allocation4], 4294955008  ;;  %v1023_v0 = vmov 0.0|0.0   ;;  %vm1024_vm0 = vmmov 0   ;;  %v1025_v1 = vmov 0.0   ;;  %vm85_vm1 = vcmask 64512  }
  0x14   :  { %833 = vmatprep.subr.bf16.mxu1 %v1023_v0  ;;  %782 = vmatprep.mubr.msk.f32.mxu1 %vm1024_vm0, %v1025_v1  ;;  %vm1067_vm2 = vmpackc.low %vm85_vm1, %vm85_vm1  ;;  %v53_v3 = vld [vmem:[%s1302_s3 + $0x80] sm:$0xff]  ;;  %v54_v4 = vld [vmem:[%s1302_s3 + $0x88] sm:$0xff] }
  0x15   :  { %v37_v5 = vld [vmem:[%s1302_s3] sm:$0xff]  ;;  %v785_v6 = vpack.c.bf16 %v54_v4, %v53_v3  ;;  %v38_v7 = vld [vmem:[%s1302_s3 + $0x8] sm:$0xff]  ;;  %v55_v12 = vld [vmem:[%s1302_s3 + $0x90] sm:$0xff] }
  0x16   :  { %v69_v8 = vld [vmem:[%s1302_s3 + $0x100] sm:$0xff]  ;;  %v70_v9 = vld [vmem:[%s1302_s3 + $0x108] sm:$0xff]  ;;  %v788_v10 = vpack.c.bf16 %v38_v7, %v37_v5  ;;  %v56_v13 = vld [vmem:[%s1302_s3 + $0x98] sm:$0xff] }
  0x17   :  { %v834_v11 = vpack.c.bf16 %v70_v9, %v69_v8  ;;  %787 = vmatprep.subr.msk.bf16.mxu0 %vm1067_vm2, %v785_v6  ;;  %v791_v14 = vpack.c.bf16 %v56_v13, %v55_v12  ;;  %v39_v15 = vld [vmem:[%s1302_s3 + $0x10] sm:$0xff]  ;;  %v40_v16 = vld [vmem:[%s1302_s3 + $0x18] sm:$0xff]  ;;  %v57_v19 = vld [vmem:[%s1302_s3 + $0xa0] sm:$0xff] }
  0x18   :  { %790 = vmatpush3.bf16.xpose.msk.msra.mxu0 %vm1067_vm2, %v788_v10  ;;  %v71_v17 = vld [vmem:[%s1302_s3 + $0x110] sm:$0xff]  ;;  %v72_v18 = vld [vmem:[%s1302_s3 + $0x118] sm:$0xff]  ;;  %v58_v20 = vld [vmem:[%s1302_s3 + $0xa8] sm:$0xff]  ;;  %v794_v21 = vpack.c.bf16 %v40_v16, %v39_v15 }
  0x19   :  { %836 = vmatpush3.bf16.xpose.msk.msra.mxu1 %vm1067_vm2, %v834_v11  ;;  %793 = vmatprep.subr.msk.bf16.mxu0 %vm1067_vm2, %v791_v14  ;;  %v838_v22 = vpack.c.bf16 %v72_v18, %v71_v17  ;;  %v797_v23 = vpack.c.bf16 %v58_v20, %v57_v19  ;;  %v41_v24 = vld [vmem:[%s1302_s3 + $0x20] sm:$0xff]  ;;  %v42_v25 = vld [vmem:[%s1302_s3 + $0x28] sm:$0xff]  ;;  %v59_v28 = vld [vmem:[%s1302_s3 + $0xb0] sm:$0xff] }
  0x1a   :  { %837 = vmatprep.subr.bf16.mxu1 %v1023_v0  ;;  %v73_v26 = vld [vmem:[%s1302_s3 + $0x120] sm:$0xff]  ;;  %v74_v27 = vld [vmem:[%s1302_s3 + $0x128] sm:$0xff]  ;;  %v60_v29 = vld [vmem:[%s1302_s3 + $0xb8] sm:$0xff]  ;;  %v800_v30 = vpack.c.bf16 %v42_v25, %v41_v24 }
  0x1b   :  { %v842_v31 = vpack.c.bf16 %v74_v27, %v73_v26  ;;  %v1150_v32 = vld [vmem:[%s1300_s1] sm:$0xff]  ;;  %v803_v33 = vpack.c.bf16 %v60_v29, %v59_v28  ;;  %v43_v34 = vld [vmem:[%s1302_s3 + $0x30] sm:$0xff]  ;;  %v44_v35 = vld [vmem:[%s1302_s3 + $0x38] sm:$0xff] }
  0x1c   :  { %731 = vmatprep.mubr.msk.f32.mxu0 %vm85_vm1, %v1150_v32  ;;  %v75_v36 = vld [vmem:[%s1302_s3 + $0x130] sm:$0xff]  ;;  %v76_v37 = vld [vmem:[%s1302_s3 + $0x138] sm:$0xff]  ;;  %v61_v38 = vld [vmem:[%s1302_s3 + $0xc0] sm:$0xff]  ;;  %v806_v40 = vpack.c.bf16 %v44_v35, %v43_v34 }
  0x1d   :  { %v62_v39 = vld [vmem:[%s1302_s3 + $0xc8] sm:$0xff]  ;;  %v846_v41 = vpack.c.bf16 %v76_v37, %v75_v36  ;;  %v45_v43 = vld [vmem:[%s1302_s3 + $0x40] sm:$0xff]  ;;  %v63_v47 = vld [vmem:[%s1302_s3 + $0xd0] sm:$0xff] }
  0x1e   :  { %v809_v42 = vpack.c.bf16 %v62_v39, %v61_v38  ;;  %v46_v44 = vld [vmem:[%s1302_s3 + $0x48] sm:$0xff]  ;;  %v77_v45 = vld [vmem:[%s1302_s3 + $0x140] sm:$0xff]  ;;  %v64_v48 = vld [vmem:[%s1302_s3 + $0xd8] sm:$0xff] }
  0x1f   :  { %v78_v46 = vld [vmem:[%s1302_s3 + $0x148] sm:$0xff]  ;;  %v812_v49 = vpack.c.bf16 %v46_v44, %v45_v43  ;;  %v815_v51 = vpack.c.bf16 %v64_v48, %v63_v47  ;;  %v47_v52 = vld [vmem:[%s1302_s3 + $0x50] sm:$0xff]  ;;  %v48_v53 = vld [vmem:[%s1302_s3 + $0x58] sm:$0xff] }
  0x20   :  { %796 = vmatpush3.bf16.xpose.msk.msra.mxu0 %vm1067_vm2, %v794_v21  ;;  %v850_v50 = vpack.c.bf16 %v78_v46, %v77_v45  ;;  %v79_v54 = vld [vmem:[%s1302_s3 + $0x150] sm:$0xff]  ;;  %v80_v55 = vld [vmem:[%s1302_s3 + $0x158] sm:$0xff]  ;;  %v65_v56 = vld [vmem:[%s1302_s3 + $0xe0] sm:$0xff]  ;;  %v818_v58 = vpack.c.bf16 %v48_v53, %v47_v52 }
  0x21   :  { %840 = vmatpush3.bf16.xpose.msk.msra.mxu1 %vm1067_vm2, %v838_v22  ;;  %799 = vmatprep.subr.msk.bf16.mxu0 %vm1067_vm2, %v797_v23  ;;  %v66_v57 = vld [vmem:[%s1302_s3 + $0xe8] sm:$0xff]  ;;  %v854_v59 = vpack.c.bf16 %v80_v55, %v79_v54  ;;  %v49_v61 = vld [vmem:[%s1302_s3 + $0x60] sm:$0xff]  ;;  %v67_v3 = vld [vmem:[%s1302_s3 + $0xf0] sm:$0xff] }
  0x22   :  { %841 = vmatprep.subr.bf16.mxu1 %v1023_v0  ;;  %v821_v60 = vpack.c.bf16 %v66_v57, %v65_v56  ;;  %v50_v62 = vld [vmem:[%s1302_s3 + $0x68] sm:$0xff]  ;;  %v81_v63 = vld [vmem:[%s1302_s3 + $0x160] sm:$0xff]  ;;  %v68_v4 = vld [vmem:[%s1302_s3 + $0xf8] sm:$0xff] }
  0x23   :  { %v82_v1 = vld [vmem:[%s1302_s3 + $0x168] sm:$0xff]  ;;  %v824_v5 = vpack.c.bf16 %v50_v62, %v49_v61  ;;  %v827_v7 = vpack.c.bf16 %v68_v4, %v67_v3  ;;  %v51_v8 = vld [vmem:[%s1302_s3 + $0x70] sm:$0xff]  ;;  %v52_v9 = vld [vmem:[%s1302_s3 + $0x78] sm:$0xff] }
  0x24   :  { %v858_v6 = vpack.c.bf16 %v82_v1, %v81_v63  ;;  %v83_v10 = vld [vmem:[%s1302_s3 + $0x170] sm:$0xff]  ;;  %v84_v11 = vld [vmem:[%s1302_s3 + $0x178] sm:$0xff]  ;;  %v383_v12 = vld [vmem:[#allocation3 + $0x8] sm:$0xff]  ;;  %v830_v16 = vpack.c.bf16 %v52_v9, %v51_v8 }
  0x25   :  { %v385_v13 = vld [vmem:[#allocation3 + $0x18] sm:$0xff]  ;;  %v447_v14 = vld [vmem:[#allocation3 + $0x208] sm:$0xff]  ;;  %v862_v17 = vpack.c.bf16 %v84_v11, %v83_v10  ;;  %v384_v20 = vld [vmem:[#allocation3 + $0x10] sm:$0xff] }
  0x26   :  { %v449_v15 = vld [vmem:[#allocation3 + $0x218] sm:$0xff]  ;;  %v865_v18 = vpack.c.bf16 %v385_v13, %v383_v12  ;;  %v446_v21 = vld [vmem:[#allocation3 + $0x200] sm:$0xff]  ;;  %v448_v22 = vld [vmem:[#allocation3 + $0x210] sm:$0xff] }
  0x27   :  { %v929_v19 = vpack.c.bf16 %v449_v15, %v447_v14  ;;  %v387_v23 = vld [vmem:[#allocation3 + $0x28] sm:$0xff]  ;;  %v389_v24 = vld [vmem:[#allocation3 + $0x38] sm:$0xff]  ;;  %v931_v28 = vpack.c.bf16 %v448_v22, %v446_v21  ;;  %v450_v34 = vld [vmem:[#allocation3 + $0x220] sm:$0xff] }
  0x28   :  { %802 = vmatpush3.bf16.xpose.msk.msra.mxu0 %vm1067_vm2, %v800_v30  ;;  %v451_v25 = vld [vmem:[#allocation3 + $0x228] sm:$0xff]  ;;  %v453_v26 = vld [vmem:[#allocation3 + $0x238] sm:$0xff]  ;;  %v869_v29 = vpack.c.bf16 %v389_v24, %v387_v23  ;;  %v452_v35 = vld [vmem:[#allocation3 + $0x230] sm:$0xff] }
  0x29   :  { %844 = vmatpush3.bf16.xpose.msk.msra.mxu1 %vm1067_vm2, %v842_v31  ;;  %805 = vmatprep.subr.msk.bf16.mxu0 %vm1067_vm2, %v803_v33  ;;  %v933_v30 = vpack.c.bf16 %v453_v26, %v451_v25  ;;  %v381_v2 = vld [vmem:[%s1299_s0 + $0x8] sm:$0xff]  ;;  %v386_v31 = vld [vmem:[#allocation3 + $0x20] sm:$0xff]  ;;  %v388_v33 = vld [vmem:[#allocation3 + $0x30] sm:$0xff] }
  0x2a   :  { %845 = vmatprep.subr.bf16.mxu1 %v1023_v0  ;;  %v391_v36 = vld [vmem:[#allocation3 + $0x48] sm:$0xff]  ;;  %v393_v37 = vld [vmem:[#allocation3 + $0x58] sm:$0xff]  ;;  %v390_v43 = vld [vmem:[#allocation3 + $0x40] sm:$0xff] }
  0x2b   :  { %v455_v38 = vld [vmem:[#allocation3 + $0x248] sm:$0xff]  ;;  %v457_v39 = vld [vmem:[#allocation3 + $0x258] sm:$0xff]  ;;  %v392_v44 = vld [vmem:[#allocation3 + $0x50] sm:$0xff] }
  0x2c   :  { %v454_v45 = vld [vmem:[#allocation3 + $0x240] sm:$0xff]  ;;  %v456_v46 = vld [vmem:[#allocation3 + $0x250] sm:$0xff]  ;;  %v395_v47 = vld [vmem:[#allocation3 + $0x68] sm:$0xff] }
  0x2d   :  { %v397_v48 = vld [vmem:[#allocation3 + $0x78] sm:$0xff]  ;;  %v939_v52 = vpack.c.bf16 %v456_v46, %v454_v45  ;;  %v394_v55 = vld [vmem:[#allocation3 + $0x60] sm:$0xff]  ;;  %v396_v56 = vld [vmem:[#allocation3 + $0x70] sm:$0xff] }
  0x2e   :  { %v877_v53 = vpack.c.bf16 %v397_v48, %v395_v47  ;;  %v458_v57 = vld [vmem:[#allocation3 + $0x260] sm:$0xff]  ;;  %v463_v61 = vld [vmem:[#allocation3 + $0x288] sm:$0xff]  ;;  %v465_v62 = vld [vmem:[#allocation3 + $0x298] sm:$0xff]  ;;  %v879_v63 = vpack.c.bf16 %v396_v56, %v394_v55 }
  0x2f   :  { %v945_v4 = vpack.c.bf16 %v465_v62, %v463_v61  ;;  %v464_v8 = vld [vmem:[#allocation3 + $0x290] sm:$0xff]  ;;  %v403_v9 = vld [vmem:[#allocation3 + $0xa8] sm:$0xff]  ;;  %v405_v10 = vld [vmem:[#allocation3 + $0xb8] sm:$0xff] }
  0x30   :  { %808 = vmatpush3.bf16.xpose.msk.msra.mxu0 %vm1067_vm2, %v806_v40  ;;  %v871_v40 = vpack.c.bf16 %v388_v33, %v386_v31  ;;  %v467_v11 = vld [vmem:[#allocation3 + $0x2a8] sm:$0xff]  ;;  %v469_v12 = vld [vmem:[#allocation3 + $0x2b8] sm:$0xff]  ;;  %v885_v15 = vpack.c.bf16 %v405_v10, %v403_v9  ;;  %v414_v48 = vld [vmem:[#allocation3 + $0x100] sm:$0xff] }
  0x31   :  { %848 = vmatpush3.bf16.xpose.msk.msra.mxu1 %vm1067_vm2, %v846_v41  ;;  %811 = vmatprep.subr.msk.bf16.mxu0 %vm1067_vm2, %v809_v42  ;;  %v873_v41 = vpack.c.bf16 %v393_v37, %v391_v36  ;;  %v937_v42 = vpack.c.bf16 %v457_v39, %v455_v38  ;;  %v409_v21 = vld [vmem:[#allocation3 + $0xd8] sm:$0xff]  ;;  %v471_v22 = vld [vmem:[#allocation3 + $0x2c8] sm:$0xff]  ;;  %v418_v55 = vld [vmem:[#allocation3 + $0x120] sm:$0xff] }
  0x32   :  { %849 = vmatprep.subr.bf16.mxu1 %v1023_v0  ;;  %v473_v23 = vld [vmem:[#allocation3 + $0x2d8] sm:$0xff]  ;;  %v411_v31 = vld [vmem:[#allocation3 + $0xe8] sm:$0xff]  ;;  %v420_v56 = vld [vmem:[#allocation3 + $0x130] sm:$0xff] }
  0x33   :  { %v413_v33 = vld [vmem:[#allocation3 + $0xf8] sm:$0xff]  ;;  %v422_v61 = vld [vmem:[#allocation3 + $0x140] sm:$0xff]  ;;  %v424_v62 = vld [vmem:[#allocation3 + $0x150] sm:$0xff] }
  0x34   :  { %v893_v38 = vpack.c.bf16 %v413_v33, %v411_v31 }
  0x38   :  { %814 = vmatpush3.bf16.xpose.msk.msra.mxu0 %vm1067_vm2, %v812_v49  ;;  %v459_v49 = vld [vmem:[#allocation3 + $0x268] sm:$0xff] }
  0x39   :  { %852 = vmatpush3.bf16.xpose.msk.msra.mxu1 %vm1067_vm2, %v850_v50  ;;  %817 = vmatprep.subr.msk.bf16.mxu0 %vm1067_vm2, %v815_v51  ;;  %v461_v50 = vld [vmem:[#allocation3 + $0x278] sm:$0xff]  ;;  %v875_v51 = vpack.c.bf16 %v392_v44, %v390_v43  ;;  %v415_v43 = vld [vmem:[#allocation3 + $0x108] sm:$0xff] }
  0x3a   :  { %853 = vmatprep.subr.bf16.mxu1 %v1023_v0  ;;  %v941_v54 = vpack.c.bf16 %v461_v50, %v459_v49  ;;  %v417_v44 = vld [vmem:[#allocation3 + $0x118] sm:$0xff]  ;;  %v416_v49 = vld [vmem:[#allocation3 + $0x110] sm:$0xff]  ;;  %v419_v50 = vld [vmem:[#allocation3 + $0x128] sm:$0xff] }
  0x3b   :  { %v897_v47 = vpack.c.bf16 %v417_v44, %v415_v43 }
  0x40   :  { %820 = vmatpush3.bf16.xpose.msk.msra.mxu0 %vm1067_vm2, %v818_v58  ;;  %v460_v58 = vld [vmem:[#allocation3 + $0x270] sm:$0xff] }
  0x41   :  { %856 = vmatpush3.bf16.xpose.msk.msra.mxu1 %vm1067_vm2, %v854_v59  ;;  %823 = vmatprep.subr.msk.bf16.mxu0 %vm1067_vm2, %v821_v60  ;;  %v399_v59 = vld [vmem:[#allocation3 + $0x88] sm:$0xff]  ;;  %v401_v60 = vld [vmem:[#allocation3 + $0x98] sm:$0xff]  ;;  %v943_v1 = vpack.c.bf16 %v460_v58, %v458_v57 }
  0x42   :  { %857 = vmatprep.subr.bf16.mxu1 %v1023_v0  ;;  %v881_v3 = vpack.c.bf16 %v401_v60, %v399_v59  ;;  %v423_v57 = vld [vmem:[#allocation3 + $0x148] sm:$0xff]  ;;  %v425_v58 = vld [vmem:[#allocation3 + $0x158] sm:$0xff]  ;;  %v903_v59 = vpack.c.bf16 %v420_v56, %v418_v55 }
  0x43   :  { %v905_v60 = vpack.c.bf16 %v425_v58, %v423_v57 }
  0x48   :  { %826 = vmatpush3.bf16.xpose.msk.msra.mxu0 %vm1067_vm2, %v824_v5  ;;  %v398_v5 = vld [vmem:[#allocation3 + $0x80] sm:$0xff] }
  0x49   :  { %860 = vmatpush3.bf16.xpose.msk.msra.mxu1 %vm1067_vm2, %v858_v6  ;;  %829 = vmatprep.subr.msk.bf16.mxu0 %vm1067_vm2, %v827_v7  ;;  %v400_v6 = vld [vmem:[#allocation3 + $0x90] sm:$0xff]  ;;  %v462_v7 = vld [vmem:[#allocation3 + $0x280] sm:$0xff] }
  0x4a   :  { %861 = vmatprep.subr.bf16.mxu1 %v1023_v0  ;;  %v382_v0 = vld [vmem:[#allocation3] sm:$0xff]  ;;  %v883_v13 = vpack.c.bf16 %v400_v6, %v398_v5  ;;  %v947_v14 = vpack.c.bf16 %v464_v8, %v462_v7  ;;  %v428_v6 = vld [vmem:[#allocation3 + $0x170] sm:$0xff]  ;;  %v431_v7 = vld [vmem:[#allocation3 + $0x188] sm:$0xff] }
  0x4b   :  { %v867_v27 = vpack.c.bf16 %v384_v20, %v382_v0  ;;  %v468_v0 = vld [vmem:[#allocation3 + $0x2b0] sm:$0xff]  ;;  %v407_v20 = vld [vmem:[#allocation3 + $0xc8] sm:$0xff]  ;;  %v426_v5 = vld [vmem:[#allocation3 + $0x160] sm:$0xff] }
  0x4c   :  { %v889_v26 = vpack.c.bf16 %v409_v21, %v407_v20  ;;  %v433_v8 = vld [vmem:[#allocation3 + $0x198] sm:$0xff]  ;;  %v911_v9 = vpack.c.bf16 %v428_v6, %v426_v5 }
  0x4d   :  { %v913_v10 = vpack.c.bf16 %v433_v8, %v431_v7 }
  0x50   :  { %832 = vmatpush3.bf16.xpose.msk.msra.mxu0 %vm1067_vm2, %v830_v16  ;;  %v949_v16 = vpack.c.bf16 %v469_v12, %v467_v11  ;;  %v430_v11 = vld [vmem:[#allocation3 + $0x180] sm:$0xff]  ;;  %v432_v12 = vld [vmem:[#allocation3 + $0x190] sm:$0xff] }
  0x51   :  { %864 = vmatpush3.bf16.xpose.msk.msra.mxu1 %vm1067_vm2, %v862_v17  ;;  %866 = vmatprep.subr.bf16.mxu0 %v865_v18  ;;  %v402_v17 = vld [vmem:[#allocation3 + $0xa0] sm:$0xff]  ;;  %v404_v18 = vld [vmem:[#allocation3 + $0xb0] sm:$0xff] }
  0x52   :  { %930 = vmatprep.subr.bf16.mxu1 %v929_v19  ;;  %v466_v19 = vld [vmem:[#allocation3 + $0x2a0] sm:$0xff]  ;;  %v887_v24 = vpack.c.bf16 %v404_v18, %v402_v17  ;;  %v436_v18 = vld [vmem:[#allocation3 + $0x1b0] sm:$0xff] }
  0x53   :  { %v951_v25 = vpack.c.bf16 %v468_v0, %v466_v19  ;;  %v434_v17 = vld [vmem:[#allocation3 + $0x1a0] sm:$0xff]  ;;  %v439_v19 = vld [vmem:[#allocation3 + $0x1c8] sm:$0xff]  ;;  %v441_v0 = vld [vmem:[#allocation3 + $0x1d8] sm:$0xff] }
  0x54   :  { %v919_v20 = vpack.c.bf16 %v436_v18, %v434_v17  ;;  %v921_v21 = vpack.c.bf16 %v441_v0, %v439_v19 }
  0x57   :  { %732 = vmatmul.mubr.msk.f32.vlgmr.msra.gmra.mrb[0].mxu0 %vm85_vm1, %v1150_v32 }
  0x58   :  { %783 = vmatmul.mubr.msk.f32.vlgmr.msra.gmra.mrb[0].mxu1 %vm85_vm1, %v1150_v32  ;;  %868 = vmatpush1.bf16.xpose.msra.mxu0 %v867_v27  ;;  %v935_v32 = vpack.c.bf16 %v452_v35, %v450_v34  ;;  %v953_v27 = vpack.c.bf16 %v473_v23, %v471_v22  ;;  %v475_v34 = vld [vmem:[#allocation3 + $0x2e8] sm:$0xff]  ;;  %v477_v35 = vld [vmem:[#allocation3 + $0x2f8] sm:$0xff]  ;;  %v438_v22 = vld [vmem:[#allocation3 + $0x1c0] sm:$0xff] }
  0x59   :  { %932 = vmatpush1.bf16.xpose.msra.mxu1 %v931_v28  ;;  %870 = vmatprep.subr.bf16.mxu0 %v869_v29  ;;  %v406_v28 = vld [vmem:[#allocation3 + $0xc0] sm:$0xff]  ;;  %v408_v29 = vld [vmem:[#allocation3 + $0xd0] sm:$0xff]  ;;  %v957_v39 = vpack.c.bf16 %v477_v35, %v475_v34 }
  0x5a   :  { %934 = vmatprep.subr.bf16.mxu1 %v933_v30  ;;  %613 = vmatprep.mubr.f32.mxu1 %v381_v2  ;;  %v470_v30 = vld [vmem:[#allocation3 + $0x2c0] sm:$0xff]  ;;  %v891_v36 = vpack.c.bf16 %v408_v29, %v406_v28  ;;  %v440_v23 = vld [vmem:[#allocation3 + $0x1d0] sm:$0xff] }
  0x5b   :  { %542 = vmatprep.mubr.f32.mxu0 %v381_v2  ;;  %v472_v2 = vld [vmem:[#allocation3 + $0x2d0] sm:$0xff]  ;;  %v442_v28 = vld [vmem:[#allocation3 + $0x1e0] sm:$0xff] }
  0x5c   :  { %v955_v37 = vpack.c.bf16 %v472_v2, %v470_v30  ;;  %v444_v29 = vld [vmem:[#allocation3 + $0x1f0] sm:$0xff] }
  0x5d   :  { %v927_v30 = vpack.c.bf16 %v444_v29, %v442_v28 }
  0x60   :  { %872 = vmatpush1.bf16.xpose.msra.mxu0 %v871_v40  ;;  %v410_v40 = vld [vmem:[#allocation3 + $0xe0] sm:$0xff] }
  0x61   :  { %936 = vmatpush1.bf16.xpose.msra.mxu1 %v935_v32  ;;  %874 = vmatprep.subr.bf16.mxu0 %v873_v41  ;;  %v412_v32 = vld [vmem:[#allocation3 + $0xf0] sm:$0xff]  ;;  %v474_v41 = vld [vmem:[#allocation3 + $0x2e0] sm:$0xff] }
  0x62   :  { %938 = vmatprep.subr.bf16.mxu1 %v937_v42  ;;  %v476_v42 = vld [vmem:[#allocation3 + $0x2f0] sm:$0xff]  ;;  %v895_v45 = vpack.c.bf16 %v412_v32, %v410_v40 }
  0x63   :  { %v959_v46 = vpack.c.bf16 %v476_v42, %v474_v41 }
  0x68   :  { %876 = vmatpush1.bf16.xpose.msra.mxu0 %v875_v51  ;;  %v421_v51 = vld [vmem:[#allocation3 + $0x138] sm:$0xff] }
  0x69   :  { %940 = vmatpush1.bf16.xpose.msra.mxu1 %v939_v52  ;;  %878 = vmatprep.subr.bf16.mxu0 %v877_v53  ;;  %v899_v52 = vpack.c.bf16 %v416_v49, %v414_v48  ;;  %v380_v53 = vld [vmem:[%s1299_s0] sm:$0xff]  ;;  %s1026_s0 = smov [#allocation6]  }
  0x6a   :  { %942 = vmatprep.subr.bf16.mxu1 %v941_v54  ;;  %v901_v54 = vpack.c.bf16 %v421_v51, %v419_v50  ;;  %s640_s1 = sshll.u32 %s1026_s0, 4  ;;  %s641_s1 = int_to_ptr.vmem [resolvable:$true] %s640_s1 }
  0x6b   :  { %s994_s20 = scalar_lea.vmem %s641_s1, 384  ;;  %p999_p9 = scmp.lt.s32.totalorder %s641_s1, %s641_s1 }
  0x6c   :  { %p995_p8 = scmp.ne.s32.totalorder %s641_s1, %s994_s20  ;;  %p1000_p10 = scmp.lt.s32.totalorder %s994_s20, %s994_s20 }
  0x6e   :  { %p1001_p11 = por %p1000_p10, %p999_p9 }
  0x70   :  { %880 = vmatpush1.bf16.xpose.msra.mxu0 %v879_v63  ;;  %v427_v63 = vld [vmem:[#allocation3 + $0x168] sm:$0xff]  ;;  %p1002_p12 = pnand %p1001_p11, %p995_p8 }
  0x71   :  { %944 = vmatpush1.bf16.xpose.msra.mxu1 %v943_v1  ;;  %882 = vmatprep.subr.bf16.mxu0 %v881_v3  ;;  %v429_v1 = vld [vmem:[#allocation3 + $0x178] sm:$0xff]  ;;  %v907_v3 = vpack.c.bf16 %v424_v62, %v422_v61 }
  0x72   :  { %946 = vmatprep.subr.bf16.mxu1 %v945_v4  ;;  %v909_v4 = vpack.c.bf16 %v429_v1, %v427_v63 }
  0x78   :  { %884 = vmatpush1.bf16.xpose.msra.mxu0 %v883_v13  ;;  %v435_v13 = vld [vmem:[#allocation3 + $0x1a8] sm:$0xff] }
  0x79   :  { %948 = vmatpush1.bf16.xpose.msra.mxu1 %v947_v14  ;;  %886 = vmatprep.subr.bf16.mxu0 %v885_v15  ;;  %v437_v14 = vld [vmem:[#allocation3 + $0x1b8] sm:$0xff]  ;;  %v915_v15 = vpack.c.bf16 %v432_v12, %v430_v11 }
  0x7a   :  { %950 = vmatprep.subr.bf16.mxu1 %v949_v16  ;;  %v917_v16 = vpack.c.bf16 %v437_v14, %v435_v13 }
  0x80   :  { %888 = vmatpush1.bf16.xpose.msra.mxu0 %v887_v24  ;;  %v443_v24 = vld [vmem:[#allocation3 + $0x1e8] sm:$0xff] }
  0x81   :  { %952 = vmatpush1.bf16.xpose.msra.mxu1 %v951_v25  ;;  %890 = vmatprep.subr.bf16.mxu0 %v889_v26  ;;  %v445_v25 = vld [vmem:[#allocation3 + $0x1f8] sm:$0xff]  ;;  %v923_v26 = vpack.c.bf16 %v440_v23, %v438_v22 }
  0x82   :  { %954 = vmatprep.subr.bf16.mxu1 %v953_v27  ;;  %v925_v27 = vpack.c.bf16 %v445_v25, %v443_v24 }
  0x88   :  { %892 = vmatpush1.bf16.xpose.msra.mxu0 %v891_v36 }
  0x89   :  { %956 = vmatpush1.bf16.xpose.msra.mxu1 %v955_v37  ;;  %894 = vmatprep.subr.bf16.mxu0 %v893_v38 }
  0x8a   :  { %958 = vmatprep.subr.bf16.mxu1 %v957_v39 }
  0x90   :  { %896 = vmatpush1.bf16.xpose.msra.mxu0 %v895_v45 }
  0x91   :  { %960 = vmatpush1.bf16.xpose.msra.mxu1 %v959_v46  ;;  %898 = vmatprep.subr.bf16.mxu0 %v897_v47 }
  0x98   :  { %614 = vmatmul.mubr.f32.vlgmr.msra.gmra.mrb[0].mxu1 %v380_v53  ;;  %900 = vmatpush1.bf16.xpose.msra.mxu0 %v899_v52 }
  0x99   :  { %902 = vmatprep.subr.bf16.mxu0 %v901_v54 }
  0xa0   :  { %904 = vmatpush1.bf16.xpose.msra.mxu0 %v903_v59 }
  0xa1   :  { %906 = vmatprep.subr.bf16.mxu0 %v905_v60 }
  0xa8   :  { %908 = vmatpush1.bf16.xpose.msra.mxu0 %v907_v3 }
  0xa9   :  { %910 = vmatprep.subr.bf16.mxu0 %v909_v4 }
  0xb0   :  { %912 = vmatpush1.bf16.xpose.msra.mxu0 %v911_v9 }
  0xb1   :  { %914 = vmatprep.subr.bf16.mxu0 %v913_v10 }
  0xb8   :  { %916 = vmatpush1.bf16.xpose.msra.mxu0 %v915_v15 }
  0xb9   :  { %918 = vmatprep.subr.bf16.mxu0 %v917_v16 }
  0xc0   :  { %920 = vmatpush1.bf16.xpose.msra.mxu0 %v919_v20 }
  0xc1   :  { %922 = vmatprep.subr.bf16.mxu0 %v921_v21 }
  0xc8   :  { %924 = vmatpush1.bf16.xpose.msra.mxu0 %v923_v26 }
  0xc9   :  { %926 = vmatprep.subr.bf16.mxu0 %v925_v27 }
  0xd0   :  { %928 = vmatpush1.bf16.xpose.msra.mxu0 %v927_v30 }
  0xd7   :  { %543 = vmatmul.mubr.f32.vlgmr.msra.gmra.mrb[0].mxu0 %v380_v53 }
 0x16b   :  { %v615_v2 = vpop.f32.mrb[0].mxu1 }
 0x16c   :  { %633 = vst [vmem:[#allocation6 + $0x10] sm:$0xff] %v615_v2  ;;  %v617_v31 = vpop.f32.mrb[1].mxu1 }
 0x1aa   :  { %v544_v33 = vpop.f32.mrb[0].mxu0 }
 0x1ab   :  { %631 = vst [vmem:[#allocation6] sm:$0xff] %v544_v33  ;;  %v546_v34 = vpop.f32.mrb[1].mxu0 }
 0x1ac   :  { %632 = vst [vmem:[#allocation6 + $0x8] sm:$0xff] %v546_v34 }
 0x1ad   :  { %1005 = shalt.err (!%p1002_p12)
}
 0x1ae   :  { %s1006_s23 = scalar_lea.hbm %s1303_s4, 384 }
 0x1af   :  { %p1007_p13 = scmp.ne.s32.totalorder %s1303_s4, %s1006_s23  ;;  %p1010_p0 = scmp.lt.u32.totalorder %s1006_s23, %s1303_s4 }
 0x1b1   :  { %p1012_p1 = pnand %p1010_p0, %p1007_p13 }
 0x1b3   :  { %1015 = shalt.err (!%p1012_p1)
}
 0x1b4   :  { %643 = dma.vmem_to_hbm [thread:$0]  %s641_s1, 384, %s1303_s4, [#allocation5]  }
 0x1b5   :  { %1018 = dma.done.wait [#allocation5], 384  }
 0x1b6   :  { %1019 = vsyncadd [#allocation5], 4294966912 }
 0x1b7   :  { %647 = vsyncpa [#allocation4], 1 }
 0x1b8   :  { %648 = vsyncpa [#allocation5], 1 }

</bundles_post_ra>
